<compile_context>
chip_gen: v7x
topology: tpu7x:2x2x1
jax: 0.10.0
libtpu: 0.0.40
codegen_flags: <defaults>
</compile_context>

<pallas_src>
import functools

import jax
import jax.numpy as jnp
from jax.experimental import pallas as pl
from jax.experimental.pallas import tpu as pltpu


# ----------------------------------------------------------------------------
# Per-batch forward (everything stays in VMEM / vregs, nodes on the lane axis).
# ----------------------------------------------------------------------------
def _one_batch(x, w_all_t, b_all, wfsum_t, w2, b2, *, k, L, use_s, use_fs):
    """x: (T, N) float32 with nodes on lanes. Returns pred (L, N) float32."""
    # ---- getA_corr stand-in: Pearson correlation of each node's (feat*time)
    #      series; reductions run over the sublane axis (axis=0).
    # TODO(synk): original getA_corr source unavailable; Pearson correlation of
    #             the flattened (feature, time) series assumed.
    mu = jnp.mean(x, axis=0, keepdims=True)                          # (1, N)
    xc = x - mu
    xn = xc * jax.lax.rsqrt(jnp.sum(xc * xc, axis=0, keepdims=True) + 1e-6)
    xn_t = jnp.transpose(xn).astype(jnp.bfloat16)                    # (N, T), tiny
    corr = jax.lax.dot_general(xn_t, xn_t, (((1,), (1,)), ((), ())),
                               preferred_element_type=jnp.float32)   # (N, N)

    # ---- top-k neighbour threshold (k static & small); only `work` stays live.
    # TODO(synk): row ties keep all tied entries (torch.topk keeps exactly k).
    def _drop_row_max(_, w):
        row_max = jnp.max(w, axis=-1, keepdims=True)
        return jnp.where(w >= row_max, jnp.float32(-3.0e38), w)

    work = jax.lax.fori_loop(0, k - 1, _drop_row_max, corr, unroll=True)
    thr = jnp.max(work, axis=-1, keepdims=True)                      # (N, 1)
    a = jnp.where(corr >= thr, corr, jnp.float32(0.0))               # (N, N)

    # ---- masked-mean graph aggregation: computed ONCE, shared by all branches.
    denom = jnp.sum(a, axis=-1, keepdims=True)                       # (N, 1)
    denom = jnp.where(jnp.abs(denom) < 1e-3, jnp.float32(1e-3), denom)
    a_norm = (a * (1.0 / denom)).astype(jnp.bfloat16)                # row-normalised
    agg = jax.lax.dot_general(x.astype(jnp.bfloat16), a_norm,
                              (((1,), (1,)), ((), ())),
                              preferred_element_type=jnp.float32)    # (T, N)

    # ---- all three temporal projections in ONE MXU pass: [w_s|w_c|w_f]^T @ agg.
    proj = jnp.dot(w_all_t, agg.astype(jnp.bfloat16),
                   preferred_element_type=jnp.float32) + b_all       # (3L, N)

    x_spatial = proj[:L]                                             # Spatial
    sq_c = jax.nn.sigmoid(proj[L:2 * L])                             # close

    if use_fs:
        # Spatial_f: (agg + tile(sq_c, C)) @ w_f + b_f
        #          == agg @ w_f + b_f + w_f_sum^T @ sq_c   (N-on-lanes layout)
        # TODO(synk): Spatial_f internals unavailable; sq_c injected additively.
        x_temporal = proj[2 * L:] + jnp.dot(
            wfsum_t, sq_c.astype(jnp.bfloat16),
            preferred_element_type=jnp.float32)
    else:
        x_temporal = sq_c

    if use_s:
        # Fusion Linear(2L->L): single MXU pass over stacked [x_temporal; x_spatial]
        # (torch.cat order is (x_temporal, x_spatial), matching W2 columns).
        cat = jnp.concatenate([x_temporal, x_spatial],
                              axis=0).astype(jnp.bfloat16)           # (2L, N)
        pred = jnp.dot(w2, cat, preferred_element_type=jnp.float32) + b2
    else:
        pred = x_temporal                                            # Fusion(x1, None)
    return pred                                                      # (L, N)


def _fused_forward_kernel(x_ref, w_all_t_ref, b_all_ref, wfsum_t_ref,
                          w2_ref, b2_ref, out_ref, *, k, L, bt, use_s, use_fs):
    """One grid step processes `bt` batch elements, all resident on-chip."""
    w_all_t = w_all_t_ref[...]
    b_all = b_all_ref[...]
    wfsum_t = wfsum_t_ref[...]
    w2 = w2_ref[...]
    b2 = b2_ref[...]
    for i in range(bt):          # static, small (<=8); iterations independent
        out_ref[i] = _one_batch(x_ref[i], w_all_t, b_all, wfsum_t, w2, b2,
                                k=k, L=L, use_s=use_s, use_fs=use_fs)


def _full_spec(shape):
    nd = len(shape)
    return pl.BlockSpec(tuple(shape), lambda b: (0,) * nd)


# ----------------------------------------------------------------------------
# Model wrapper: parameter setup + single fused pallas_call.
# ----------------------------------------------------------------------------
class TSTGCNPallas:
    def __init__(self, len_closeness, external_size, N, k, spatial,
                 s_model_d, c_model_d, p_model_d, t_model_d,
                 dim_hid=16, drop_rate=0.1, feat=1,
                 key=jax.random.PRNGKey(42)):
        del external_size, spatial, s_model_d, c_model_d, p_model_d
        del t_model_d, dim_hid, drop_rate
        self.k = int(k)
        self.L = int(len_closeness)
        self.feat = int(feat)
        L, T = self.L, self.feat * self.L
        ks = jax.random.split(key, 8)
        scale = 0.1
        # Spatial / close / Spatial_f temporal projections (T -> L).
        w_s = scale * jax.random.normal(ks[0], (T, L), jnp.float32)
        b_s = scale * jax.random.normal(ks[1], (1, L), jnp.float32)
        w_c = scale * jax.random.normal(ks[2], (T, L), jnp.float32)
        b_c = scale * jax.random.normal(ks[3], (1, L), jnp.float32)
        w_f = scale * jax.random.normal(ks[4], (T, L), jnp.float32)
        b_f = scale * jax.random.normal(ks[5], (1, L), jnp.float32)
        # [w_s | w_c | w_f]^T so the kernel does (3L,T) @ (T,N); pre-cast bf16.
        self.w_all_t = jnp.transpose(
            jnp.concatenate([w_s, w_c, w_f], axis=-1)).astype(jnp.bfloat16)
        self.b_all = jnp.concatenate([b_s, b_c, b_f], axis=-1).reshape(3 * L, 1)
        # tile(sq_c, C) @ w_f == w_f_sum^T @ sq_c in the N-on-lanes layout.
        self.w_f_sum_t = jnp.transpose(
            jnp.sum(w_f.reshape(self.feat, L, L), axis=0)).astype(jnp.bfloat16)
        # Fusion nn.Linear(2L, L): weight (L, 2L); columns [:L] pair x_temporal.
        W2 = scale * jax.random.normal(ks[6], (L, 2 * L), jnp.float32)
        b2 = scale * jax.random.normal(ks[7], (L,), jnp.float32)
        self.fusion_w2 = W2.astype(jnp.bfloat16)
        self.fusion_b = b2.reshape(L, 1)

    def forward(self, x_c, mode, c, s, FS):
        del mode
        if not c:
            # The PyTorch module crashes whenever c=False (sq_c is None and is
            # used both as x_temporal and inside the FS branch) -- fail loudly.
            raise ValueError("T_STGCN.forward requires c=True (sq_c is needed "
                             "for the temporal output / FS branch).")
        bs, L, C, N = x_c.shape
        assert L == self.L and C == self.feat
        T = C * L
        # Lane-dense layout for the whole pipeline: (bs, T, N), nodes on lanes.
        x_tn = jnp.transpose(x_c, (0, 2, 1, 3)).reshape(bs, T, N)
        x_tn = x_tn.astype(jnp.float32)

        # Pack several batch elements per grid step when N is lane-small
        # (amortizes per-step overhead / tiny DMAs on single-TC v5e/v6e).
        bt = 1
        if N <= 128:
            for cand in range(min(bs, 8), 0, -1):
                if bs % cand == 0:
                    bt = cand
                    break
        grid = (bs // bt,)

        # Rough per-step VMEM estimate; only raise the scoped limit when needed.
        est = 4 * (3 * N * N + bt * (2 * T + 8 * L) * N) * 2 + (2 << 20)
        vmem_limit = (int(min(max(est, 32 << 20), 64 << 20))
                      if est > (12 << 20) else None)
        # TODO(synk): for very large N (v7x: 64 MiB VMEM) corr should be
        #             row-tiled via a second grid axis; not needed here.

        kern = functools.partial(_fused_forward_kernel, k=self.k, L=L, bt=bt,
                                 use_s=bool(s), use_fs=bool(FS))
        out = pl.pallas_call(
            kern,
            out_shape=jax.ShapeDtypeStruct((bs, L, N), jnp.float32),
            grid=grid,
            in_specs=[pl.BlockSpec((bt, T, N), lambda b: (b, 0, 0)),
                      _full_spec(self.w_all_t.shape),
                      _full_spec(self.b_all.shape),
                      _full_spec(self.w_f_sum_t.shape),
                      _full_spec(self.fusion_w2.shape),
                      _full_spec(self.fusion_b.shape)],
            out_specs=pl.BlockSpec((bt, L, N), lambda b: (b, 0, 0)),
            compiler_params=pltpu.CompilerParams(
                dimension_semantics=("parallel",),
                vmem_limit_bytes=vmem_limit),
        )(x_tn, self.w_all_t, self.b_all, self.w_f_sum_t,
          self.fusion_w2, self.fusion_b)
        return out                                                   # (bs, L, N)

    # Pure-JAX reference mirroring the kernel's bf16/f32 numerics (for tests).
    def reference_forward(self, x_c, s, FS):
        f32, bf16 = jnp.float32, jnp.bfloat16
        hi = jax.lax.Precision.HIGHEST
        bs, L, C, N = x_c.shape
        T = C * L
        x = jnp.transpose(x_c, (0, 2, 1, 3)).reshape(bs, T, N).astype(f32)
        mu = jnp.mean(x, axis=1, keepdims=True)
        xc = x - mu
        xn = xc * jax.lax.rsqrt(jnp.sum(xc * xc, axis=1, keepdims=True) + 1e-6)
        xnb = xn.astype(bf16).astype(f32)
        corr = jnp.einsum('bti,btj->bij', xnb, xnb, precision=hi)
        work = corr
        for _ in range(self.k - 1):
            row_max = jnp.max(work, axis=-1, keepdims=True)
            work = jnp.where(work >= row_max, -3.0e38, work)
        thr = jnp.max(work, axis=-1, keepdims=True)
        a = jnp.where(corr >= thr, corr, 0.0)
        denom = jnp.sum(a, axis=-1, keepdims=True)
        denom = jnp.where(jnp.abs(denom) < 1e-3, 1e-3, denom)
        anb = (a / denom).astype(bf16).astype(f32)
        xb = x.astype(bf16).astype(f32)
        agg = jnp.einsum('btj,bij->bti', xb, anb, precision=hi)
        proj = jnp.einsum('lt,btn->bln', self.w_all_t.astype(f32),
                          agg.astype(bf16).astype(f32),
                          precision=hi) + self.b_all[None]
        x_spatial = proj[:, :L]
        sq_c = jax.nn.sigmoid(proj[:, L:2 * L])
        if FS:
            x_temporal = proj[:, 2 * L:] + jnp.einsum(
                'lm,bmn->bln', self.w_f_sum_t.astype(f32),
                sq_c.astype(bf16).astype(f32), precision=hi)
        else:
            x_temporal = sq_c
        if s:
            cat = jnp.concatenate([x_temporal, x_spatial], axis=1)
            pred = jnp.einsum('lm,bmn->bln', self.fusion_w2.astype(f32),
                              cat.astype(bf16).astype(f32),
                              precision=hi) + self.fusion_b[None]
        else:
            pred = x_temporal
        return pred


if __name__ == "__main__":
    key = jax.random.PRNGKey(0)
    bs, L, C, N, k = 2, 8, 1, 16, 4
    x_c = jax.random.normal(key, (bs, L, C, N), jnp.float32)

    model = TSTGCNPallas(len_closeness=L, external_size=8, N=N, k=k, spatial=N,
                         s_model_d=32, c_model_d=32, p_model_d=32, t_model_d=32,
                         feat=C)

    # Exercise all flag combinations valid in the PyTorch module and compare
    # against the pure-JAX reference (same stand-in math, mirrored numerics).
    for (c_, s_, fs_) in [(True, True, True), (True, False, False),
                          (True, True, False), (True, False, True)]:
        pred = jax.block_until_ready(model.forward(x_c, "train", c_, s_, fs_))
        assert pred.shape == (bs, L, N), pred.shape
        assert bool(jnp.all(jnp.isfinite(pred)))
        ref = model.reference_forward(x_c, s_, fs_)
        err = float(jnp.max(jnp.abs(pred - ref)))
        assert err < 6e-2, f"max |pred-ref| = {err} for flags {(c_, s_, fs_)}"

    print("KERNEL_OK")
</pallas_src>

<mosaic_0001>
module attributes {stable_mosaic.version = 11 : i64} {
  func.func @_fused_forward_kernel(%arg0: i32, %arg1: memref<2x8x16xf32, #tpu.memory_space<vmem>>, %arg2: memref<24x8xbf16, #tpu.memory_space<vmem>>, %arg3: memref<24x1xf32, #tpu.memory_space<vmem>>, %arg4: memref<8x8xbf16, #tpu.memory_space<vmem>>, %arg5: memref<8x16xbf16, #tpu.memory_space<vmem>>, %arg6: memref<8x1xf32, #tpu.memory_space<vmem>>, %arg7: memref<2x8x16xf32, #tpu.memory_space<vmem>>) attributes {dimension_semantics = [#tpu.dimension_semantics<parallel>], iteration_bounds = array<i64: 1>, scalar_prefetch = 0 : i64, scratch_operands = 0 : i64, tpu.core_type = #tpu.core_type<tc>, window_params = [{transform_indices = @transform_0, window_bounds = array<i64: 2, 8, 16>}, {pipeline_mode = #tpu.pipeline_mode<synchronous>, transform_indices = @transform_1, window_bounds = array<i64: 24, 8>}, {pipeline_mode = #tpu.pipeline_mode<synchronous>, transform_indices = @transform_2, window_bounds = array<i64: 24, 1>}, {pipeline_mode = #tpu.pipeline_mode<synchronous>, transform_indices = @transform_3, window_bounds = array<i64: 8, 8>}, {pipeline_mode = #tpu.pipeline_mode<synchronous>, transform_indices = @transform_4, window_bounds = array<i64: 8, 16>}, {pipeline_mode = #tpu.pipeline_mode<synchronous>, transform_indices = @transform_5, window_bounds = array<i64: 8, 1>}, {transform_indices = @transform_6, window_bounds = array<i64: 2, 8, 16>}]} {
    %c0 = arith.constant 0 : index
    %c0_0 = arith.constant 0 : index
    %0 = vector.load %arg2[%c0, %c0_0] : memref<24x8xbf16, #tpu.memory_space<vmem>>, vector<24x8xbf16>
    %c0_1 = arith.constant 0 : index
    %c0_2 = arith.constant 0 : index
    %1 = vector.load %arg3[%c0_1, %c0_2] : memref<24x1xf32, #tpu.memory_space<vmem>>, vector<24x1xf32>
    %c0_3 = arith.constant 0 : index
    %c0_4 = arith.constant 0 : index
    %2 = vector.load %arg4[%c0_3, %c0_4] : memref<8x8xbf16, #tpu.memory_space<vmem>>, vector<8x8xbf16>
    %c0_5 = arith.constant 0 : index
    %c0_6 = arith.constant 0 : index
    %3 = vector.load %arg5[%c0_5, %c0_6] : memref<8x16xbf16, #tpu.memory_space<vmem>>, vector<8x16xbf16>
    %c0_7 = arith.constant 0 : index
    %c0_8 = arith.constant 0 : index
    %4 = vector.load %arg6[%c0_7, %c0_8] : memref<8x1xf32, #tpu.memory_space<vmem>>, vector<8x1xf32>
    %c0_9 = arith.constant 0 : index
    %c0_10 = arith.constant 0 : index
    %c0_11 = arith.constant 0 : index
    %5 = vector.load %arg1[%c0_9, %c0_10, %c0_11] : memref<2x8x16xf32, #tpu.memory_space<vmem>>, vector<1x8x16xf32>
    %6 = vector.shape_cast %5 : vector<1x8x16xf32> to vector<8x16xf32>
    %cst = arith.constant dense<0.000000e+00> : vector<16xf32>
    %7 = vector.multi_reduction <add>, %6, %cst [0] : vector<8x16xf32> to vector<16xf32>
    %8 = vector.shape_cast %7 : vector<16xf32> to vector<1x16xf32>
    %cst_12 = arith.constant 8.000000e+00 : f32
    %9 = vector.broadcast %cst_12 : f32 to vector<1x16xf32>
    %10 = arith.divf %8, %9 : vector<1x16xf32>
    %11 = vector.broadcast %10 : vector<1x16xf32> to vector<8x16xf32>
    %12 = arith.subf %6, %11 : vector<8x16xf32>
    %13 = arith.mulf %12, %12 : vector<8x16xf32>
    %cst_13 = arith.constant dense<0.000000e+00> : vector<16xf32>
    %14 = vector.multi_reduction <add>, %13, %cst_13 [0] : vector<8x16xf32> to vector<16xf32>
    %15 = vector.shape_cast %14 : vector<16xf32> to vector<1x16xf32>
    %cst_14 = arith.constant 9.99999997E-7 : f32
    %16 = vector.broadcast %cst_14 : f32 to vector<1x16xf32>
    %17 = arith.addf %15, %16 : vector<1x16xf32>
    %18 = math.rsqrt %17 : vector<1x16xf32>
    %19 = vector.broadcast %18 : vector<1x16xf32> to vector<8x16xf32>
    %20 = arith.mulf %12, %19 : vector<8x16xf32>
    %21 = tpu.transpose %20, [1, 0] : vector<8x16xf32> -> vector<16x8xf32>
    %22 = arith.truncf %21 : vector<16x8xf32> to vector<16x8xbf16>
    %cst_15 = arith.constant dense<0.000000e+00> : vector<16x16xf32>
    %23 = tpu.matmul %22, %22, %cst_15 {dimension_numbers = #tpu.dot_dimension_numbers<[1], [1], [0], [0], [0, 0, 1, 0], [], []>} : vector<16x8xbf16>, vector<16x8xbf16>, vector<16x16xf32> -> vector<16x16xf32>
    %c0_i32 = arith.constant 0 : i32
    %cst_16 = arith.constant dense<0xFF800000> : vector<16xf32>
    %24 = vector.multi_reduction <maximumf>, %23, %cst_16 [1] : vector<16x16xf32> to vector<16xf32>
    %25 = vector.shape_cast %24 : vector<16xf32> to vector<16x1xf32>
    %26 = vector.broadcast %25 : vector<16x1xf32> to vector<16x16xf32>
    %27 = arith.cmpf oge, %23, %26 : vector<16x16xf32>
    %cst_17 = arith.constant -3.000000e+38 : f32
    %28 = vector.broadcast %cst_17 : f32 to vector<16x16xf32>
    %29 = arith.select %27, %28, %23 : vector<16x16xi1>, vector<16x16xf32>
    %c1_i32 = arith.constant 1 : i32
    %cst_18 = arith.constant dense<0xFF800000> : vector<16xf32>
    %30 = vector.multi_reduction <maximumf>, %29, %cst_18 [1] : vector<16x16xf32> to vector<16xf32>
    %31 = vector.shape_cast %30 : vector<16xf32> to vector<16x1xf32>
    %32 = vector.broadcast %31 : vector<16x1xf32> to vector<16x16xf32>
    %33 = arith.cmpf oge, %29, %32 : vector<16x16xf32>
    %cst_19 = arith.constant -3.000000e+38 : f32
    %34 = vector.broadcast %cst_19 : f32 to vector<16x16xf32>
    %35 = arith.select %33, %34, %29 : vector<16x16xi1>, vector<16x16xf32>
    %c2_i32 = arith.constant 2 : i32
    %cst_20 = arith.constant dense<0xFF800000> : vector<16xf32>
    %36 = vector.multi_reduction <maximumf>, %35, %cst_20 [1] : vector<16x16xf32> to vector<16xf32>
    %37 = vector.shape_cast %36 : vector<16xf32> to vector<16x1xf32>
    %38 = vector.broadcast %37 : vector<16x1xf32> to vector<16x16xf32>
    %39 = arith.cmpf oge, %35, %38 : vector<16x16xf32>
    %cst_21 = arith.constant -3.000000e+38 : f32
    %40 = vector.broadcast %cst_21 : f32 to vector<16x16xf32>
    %41 = arith.select %39, %40, %35 : vector<16x16xi1>, vector<16x16xf32>
    %cst_22 = arith.constant dense<0xFF800000> : vector<16xf32>
    %42 = vector.multi_reduction <maximumf>, %41, %cst_22 [1] : vector<16x16xf32> to vector<16xf32>
    %43 = vector.shape_cast %42 : vector<16xf32> to vector<16x1xf32>
    %44 = vector.broadcast %43 : vector<16x1xf32> to vector<16x16xf32>
    %45 = arith.cmpf oge, %23, %44 : vector<16x16xf32>
    %cst_23 = arith.constant 0.000000e+00 : f32
    %46 = vector.broadcast %cst_23 : f32 to vector<16x16xf32>
    %47 = arith.select %45, %23, %46 : vector<16x16xi1>, vector<16x16xf32>
    %cst_24 = arith.constant dense<0.000000e+00> : vector<16xf32>
    %48 = vector.multi_reduction <add>, %47, %cst_24 [1] : vector<16x16xf32> to vector<16xf32>
    %49 = vector.shape_cast %48 : vector<16xf32> to vector<16x1xf32>
    %50 = math.absf %49 : vector<16x1xf32>
    %cst_25 = arith.constant 1.000000e-03 : f32
    %51 = vector.broadcast %cst_25 : f32 to vector<16x1xf32>
    %52 = arith.cmpf olt, %50, %51 : vector<16x1xf32>
    %cst_26 = arith.constant 1.000000e-03 : f32
    %53 = vector.broadcast %cst_26 : f32 to vector<16x1xf32>
    %54 = arith.select %52, %53, %49 : vector<16x1xi1>, vector<16x1xf32>
    %cst_27 = arith.constant 1.000000e+00 : f32
    %55 = vector.broadcast %cst_27 : f32 to vector<16x1xf32>
    %56 = arith.divf %55, %54 : vector<16x1xf32>
    %57 = vector.broadcast %56 : vector<16x1xf32> to vector<16x16xf32>
    %58 = arith.mulf %47, %57 : vector<16x16xf32>
    %59 = arith.truncf %58 : vector<16x16xf32> to vector<16x16xbf16>
    %60 = arith.truncf %6 : vector<8x16xf32> to vector<8x16xbf16>
    %cst_28 = arith.constant dense<0.000000e+00> : vector<8x16xf32>
    %61 = tpu.matmul %60, %59, %cst_28 {dimension_numbers = #tpu.dot_dimension_numbers<[1], [1], [0], [0], [0, 0, 1, 0], [], []>} : vector<8x16xbf16>, vector<16x16xbf16>, vector<8x16xf32> -> vector<8x16xf32>
    %62 = arith.truncf %61 : vector<8x16xf32> to vector<8x16xbf16>
    %cst_29 = arith.constant dense<0.000000e+00> : vector<24x16xf32>
    %63 = tpu.matmul %0, %62, %cst_29 {dimension_numbers = #tpu.dot_dimension_numbers<[1], [0], [0], [1], [0, 0, 1, 1], [], []>} : vector<24x8xbf16>, vector<8x16xbf16>, vector<24x16xf32> -> vector<24x16xf32>
    %64 = vector.broadcast %1 : vector<24x1xf32> to vector<24x16xf32>
    %65 = arith.addf %63, %64 : vector<24x16xf32>
    %66 = vector.extract_strided_slice %65 {offsets = [0, 0], sizes = [8, 16], strides = [1, 1]} : vector<24x16xf32> to vector<8x16xf32>
    %67 = vector.extract_strided_slice %65 {offsets = [8, 0], sizes = [8, 16], strides = [1, 1]} : vector<24x16xf32> to vector<8x16xf32>
    %68 = arith.negf %67 : vector<8x16xf32>
    %69 = math.exp %68 : vector<8x16xf32>
    %cst_30 = arith.constant 1.000000e+00 : f32
    %70 = vector.broadcast %cst_30 : f32 to vector<8x16xf32>
    %71 = arith.addf %70, %69 : vector<8x16xf32>
    %72 = arith.divf %70, %71 : vector<8x16xf32>
    %73 = vector.extract_strided_slice %65 {offsets = [16, 0], sizes = [8, 16], strides = [1, 1]} : vector<24x16xf32> to vector<8x16xf32>
    %74 = arith.truncf %72 : vector<8x16xf32> to vector<8x16xbf16>
    %cst_31 = arith.constant dense<0.000000e+00> : vector<8x16xf32>
    %75 = tpu.matmul %2, %74, %cst_31 {dimension_numbers = #tpu.dot_dimension_numbers<[1], [0], [0], [1], [0, 0, 1, 1], [], []>} : vector<8x8xbf16>, vector<8x16xbf16>, vector<8x16xf32> -> vector<8x16xf32>
    %76 = arith.addf %73, %75 : vector<8x16xf32>
    %77 = tpu.concatenate %76, %66 in 0 : vector<8x16xf32>, vector<8x16xf32> -> vector<16x16xf32>
    %78 = arith.truncf %77 : vector<16x16xf32> to vector<16x16xbf16>
    %cst_32 = arith.constant dense<0.000000e+00> : vector<8x16xf32>
    %79 = tpu.matmul %3, %78, %cst_32 {dimension_numbers = #tpu.dot_dimension_numbers<[1], [0], [0], [1], [0, 0, 1, 1], [], []>} : vector<8x16xbf16>, vector<16x16xbf16>, vector<8x16xf32> -> vector<8x16xf32>
    %80 = vector.broadcast %4 : vector<8x1xf32> to vector<8x16xf32>
    %81 = arith.addf %79, %80 : vector<8x16xf32>
    %c0_33 = arith.constant 0 : index
    %c0_34 = arith.constant 0 : index
    %c0_35 = arith.constant 0 : index
    %82 = vector.load %arg7[%c0_33, %c0_34, %c0_35] : memref<2x8x16xf32, #tpu.memory_space<vmem>>, vector<1x8x16xf32>
    %83 = vector.shape_cast %82 : vector<1x8x16xf32> to vector<8x16xf32>
    %84 = vector.shape_cast %81 : vector<8x16xf32> to vector<1x8x16xf32>
    tpu.vector_store %arg7[%c0_33, %c0_34, %c0_35], %84 {strides = array<i32>} : memref<2x8x16xf32, #tpu.memory_space<vmem>>, vector<1x8x16xf32>,
    %c1 = arith.constant 1 : index
    %c0_36 = arith.constant 0 : index
    %c0_37 = arith.constant 0 : index
    %85 = vector.load %arg1[%c1, %c0_36, %c0_37] : memref<2x8x16xf32, #tpu.memory_space<vmem>>, vector<1x8x16xf32>
    %86 = vector.shape_cast %85 : vector<1x8x16xf32> to vector<8x16xf32>
    %cst_38 = arith.constant dense<0.000000e+00> : vector<16xf32>
    %87 = vector.multi_reduction <add>, %86, %cst_38 [0] : vector<8x16xf32> to vector<16xf32>
    %88 = vector.shape_cast %87 : vector<16xf32> to vector<1x16xf32>
    %cst_39 = arith.constant 8.000000e+00 : f32
    %89 = vector.broadcast %cst_39 : f32 to vector<1x16xf32>
    %90 = arith.divf %88, %89 : vector<1x16xf32>
    %91 = vector.broadcast %90 : vector<1x16xf32> to vector<8x16xf32>
    %92 = arith.subf %86, %91 : vector<8x16xf32>
    %93 = arith.mulf %92, %92 : vector<8x16xf32>
    %cst_40 = arith.constant dense<0.000000e+00> : vector<16xf32>
    %94 = vector.multi_reduction <add>, %93, %cst_40 [0] : vector<8x16xf32> to vector<16xf32>
    %95 = vector.shape_cast %94 : vector<16xf32> to vector<1x16xf32>
    %cst_41 = arith.constant 9.99999997E-7 : f32
    %96 = vector.broadcast %cst_41 : f32 to vector<1x16xf32>
    %97 = arith.addf %95, %96 : vector<1x16xf32>
    %98 = math.rsqrt %97 : vector<1x16xf32>
    %99 = vector.broadcast %98 : vector<1x16xf32> to vector<8x16xf32>
    %100 = arith.mulf %92, %99 : vector<8x16xf32>
    %101 = tpu.transpose %100, [1, 0] : vector<8x16xf32> -> vector<16x8xf32>
    %102 = arith.truncf %101 : vector<16x8xf32> to vector<16x8xbf16>
    %cst_42 = arith.constant dense<0.000000e+00> : vector<16x16xf32>
    %103 = tpu.matmul %102, %102, %cst_42 {dimension_numbers = #tpu.dot_dimension_numbers<[1], [1], [0], [0], [0, 0, 1, 0], [], []>} : vector<16x8xbf16>, vector<16x8xbf16>, vector<16x16xf32> -> vector<16x16xf32>
    %c0_i32_43 = arith.constant 0 : i32
    %cst_44 = arith.constant dense<0xFF800000> : vector<16xf32>
    %104 = vector.multi_reduction <maximumf>, %103, %cst_44 [1] : vector<16x16xf32> to vector<16xf32>
    %105 = vector.shape_cast %104 : vector<16xf32> to vector<16x1xf32>
    %106 = vector.broadcast %105 : vector<16x1xf32> to vector<16x16xf32>
    %107 = arith.cmpf oge, %103, %106 : vector<16x16xf32>
    %cst_45 = arith.constant -3.000000e+38 : f32
    %108 = vector.broadcast %cst_45 : f32 to vector<16x16xf32>
    %109 = arith.select %107, %108, %103 : vector<16x16xi1>, vector<16x16xf32>
    %c1_i32_46 = arith.constant 1 : i32
    %cst_47 = arith.constant dense<0xFF800000> : vector<16xf32>
    %110 = vector.multi_reduction <maximumf>, %109, %cst_47 [1] : vector<16x16xf32> to vector<16xf32>
    %111 = vector.shape_cast %110 : vector<16xf32> to vector<16x1xf32>
    %112 = vector.broadcast %111 : vector<16x1xf32> to vector<16x16xf32>
    %113 = arith.cmpf oge, %109, %112 : vector<16x16xf32>
    %cst_48 = arith.constant -3.000000e+38 : f32
    %114 = vector.broadcast %cst_48 : f32 to vector<16x16xf32>
    %115 = arith.select %113, %114, %109 : vector<16x16xi1>, vector<16x16xf32>
    %c2_i32_49 = arith.constant 2 : i32
    %cst_50 = arith.constant dense<0xFF800000> : vector<16xf32>
    %116 = vector.multi_reduction <maximumf>, %115, %cst_50 [1] : vector<16x16xf32> to vector<16xf32>
    %117 = vector.shape_cast %116 : vector<16xf32> to vector<16x1xf32>
    %118 = vector.broadcast %117 : vector<16x1xf32> to vector<16x16xf32>
    %119 = arith.cmpf oge, %115, %118 : vector<16x16xf32>
    %cst_51 = arith.constant -3.000000e+38 : f32
    %120 = vector.broadcast %cst_51 : f32 to vector<16x16xf32>
    %121 = arith.select %119, %120, %115 : vector<16x16xi1>, vector<16x16xf32>
    %cst_52 = arith.constant dense<0xFF800000> : vector<16xf32>
    %122 = vector.multi_reduction <maximumf>, %121, %cst_52 [1] : vector<16x16xf32> to vector<16xf32>
    %123 = vector.shape_cast %122 : vector<16xf32> to vector<16x1xf32>
    %124 = vector.broadcast %123 : vector<16x1xf32> to vector<16x16xf32>
    %125 = arith.cmpf oge, %103, %124 : vector<16x16xf32>
    %cst_53 = arith.constant 0.000000e+00 : f32
    %126 = vector.broadcast %cst_53 : f32 to vector<16x16xf32>
    %127 = arith.select %125, %103, %126 : vector<16x16xi1>, vector<16x16xf32>
    %cst_54 = arith.constant dense<0.000000e+00> : vector<16xf32>
    %128 = vector.multi_reduction <add>, %127, %cst_54 [1] : vector<16x16xf32> to vector<16xf32>
    %129 = vector.shape_cast %128 : vector<16xf32> to vector<16x1xf32>
    %130 = math.absf %129 : vector<16x1xf32>
    %cst_55 = arith.constant 1.000000e-03 : f32
    %131 = vector.broadcast %cst_55 : f32 to vector<16x1xf32>
    %132 = arith.cmpf olt, %130, %131 : vector<16x1xf32>
    %cst_56 = arith.constant 1.000000e-03 : f32
    %133 = vector.broadcast %cst_56 : f32 to vector<16x1xf32>
    %134 = arith.select %132, %133, %129 : vector<16x1xi1>, vector<16x1xf32>
    %cst_57 = arith.constant 1.000000e+00 : f32
    %135 = vector.broadcast %cst_57 : f32 to vector<16x1xf32>
    %136 = arith.divf %135, %134 : vector<16x1xf32>
    %137 = vector.broadcast %136 : vector<16x1xf32> to vector<16x16xf32>
    %138 = arith.mulf %127, %137 : vector<16x16xf32>
    %139 = arith.truncf %138 : vector<16x16xf32> to vector<16x16xbf16>
    %140 = arith.truncf %86 : vector<8x16xf32> to vector<8x16xbf16>
    %cst_58 = arith.constant dense<0.000000e+00> : vector<8x16xf32>
    %141 = tpu.matmul %140, %139, %cst_58 {dimension_numbers = #tpu.dot_dimension_numbers<[1], [1], [0], [0], [0, 0, 1, 0], [], []>} : vector<8x16xbf16>, vector<16x16xbf16>, vector<8x16xf32> -> vector<8x16xf32>
    %142 = arith.truncf %141 : vector<8x16xf32> to vector<8x16xbf16>
    %cst_59 = arith.constant dense<0.000000e+00> : vector<24x16xf32>
    %143 = tpu.matmul %0, %142, %cst_59 {dimension_numbers = #tpu.dot_dimension_numbers<[1], [0], [0], [1], [0, 0, 1, 1], [], []>} : vector<24x8xbf16>, vector<8x16xbf16>, vector<24x16xf32> -> vector<24x16xf32>
    %144 = vector.broadcast %1 : vector<24x1xf32> to vector<24x16xf32>
    %145 = arith.addf %143, %144 : vector<24x16xf32>
    %146 = vector.extract_strided_slice %145 {offsets = [0, 0], sizes = [8, 16], strides = [1, 1]} : vector<24x16xf32> to vector<8x16xf32>
    %147 = vector.extract_strided_slice %145 {offsets = [8, 0], sizes = [8, 16], strides = [1, 1]} : vector<24x16xf32> to vector<8x16xf32>
    %148 = arith.negf %147 : vector<8x16xf32>
    %149 = math.exp %148 : vector<8x16xf32>
    %cst_60 = arith.constant 1.000000e+00 : f32
    %150 = vector.broadcast %cst_60 : f32 to vector<8x16xf32>
    %151 = arith.addf %150, %149 : vector<8x16xf32>
    %152 = arith.divf %150, %151 : vector<8x16xf32>
    %153 = vector.extract_strided_slice %145 {offsets = [16, 0], sizes = [8, 16], strides = [1, 1]} : vector<24x16xf32> to vector<8x16xf32>
    %154 = arith.truncf %152 : vector<8x16xf32> to vector<8x16xbf16>
    %cst_61 = arith.constant dense<0.000000e+00> : vector<8x16xf32>
    %155 = tpu.matmul %2, %154, %cst_61 {dimension_numbers = #tpu.dot_dimension_numbers<[1], [0], [0], [1], [0, 0, 1, 1], [], []>} : vector<8x8xbf16>, vector<8x16xbf16>, vector<8x16xf32> -> vector<8x16xf32>
    %156 = arith.addf %153, %155 : vector<8x16xf32>
    %157 = tpu.concatenate %156, %146 in 0 : vector<8x16xf32>, vector<8x16xf32> -> vector<16x16xf32>
    %158 = arith.truncf %157 : vector<16x16xf32> to vector<16x16xbf16>
    %cst_62 = arith.constant dense<0.000000e+00> : vector<8x16xf32>
    %159 = tpu.matmul %3, %158, %cst_62 {dimension_numbers = #tpu.dot_dimension_numbers<[1], [0], [0], [1], [0, 0, 1, 1], [], []>} : vector<8x16xbf16>, vector<16x16xbf16>, vector<8x16xf32> -> vector<8x16xf32>
    %160 = vector.broadcast %4 : vector<8x1xf32> to vector<8x16xf32>
    %161 = arith.addf %159, %160 : vector<8x16xf32>
    %c1_63 = arith.constant 1 : index
    %c0_64 = arith.constant 0 : index
    %c0_65 = arith.constant 0 : index
    %162 = vector.load %arg7[%c1_63, %c0_64, %c0_65] : memref<2x8x16xf32, #tpu.memory_space<vmem>>, vector<1x8x16xf32>
    %163 = vector.shape_cast %162 : vector<1x8x16xf32> to vector<8x16xf32>
    %164 = vector.shape_cast %161 : vector<8x16xf32> to vector<1x8x16xf32>
    tpu.vector_store %arg7[%c1_63, %c0_64, %c0_65], %164 {strides = array<i32>} : memref<2x8x16xf32, #tpu.memory_space<vmem>>, vector<1x8x16xf32>,
    return
  }
  func.func @transform_0(%arg0: i32) -> (i32, i32, i32) {
    %c0_i32 = arith.constant 0 : i32
    %c0_i32_0 = arith.constant 0 : i32
    %c0_i32_1 = arith.constant 0 : i32
    return %arg0, %c0_i32, %c0_i32_0 : i32, i32, i32
  }
  func.func @transform_1(%arg0: i32) -> (i32, i32) {
    %c0_i32 = arith.constant 0 : i32
    %c0_i32_0 = arith.constant 0 : i32
    %c0_i32_1 = arith.constant 0 : i32
    return %c0_i32, %c0_i32_0 : i32, i32
  }
  func.func @transform_2(%arg0: i32) -> (i32, i32) {
    %c0_i32 = arith.constant 0 : i32
    %c0_i32_0 = arith.constant 0 : i32
    %c0_i32_1 = arith.constant 0 : i32
    return %c0_i32, %c0_i32_0 : i32, i32
  }
  func.func @transform_3(%arg0: i32) -> (i32, i32) {
    %c0_i32 = arith.constant 0 : i32
    %c0_i32_0 = arith.constant 0 : i32
    %c0_i32_1 = arith.constant 0 : i32
    return %c0_i32, %c0_i32_0 : i32, i32
  }
  func.func @transform_4(%arg0: i32) -> (i32, i32) {
    %c0_i32 = arith.constant 0 : i32
    %c0_i32_0 = arith.constant 0 : i32
    %c0_i32_1 = arith.constant 0 : i32
    return %c0_i32, %c0_i32_0 : i32, i32
  }
  func.func @transform_5(%arg0: i32) -> (i32, i32) {
    %c0_i32 = arith.constant 0 : i32
    %c0_i32_0 = arith.constant 0 : i32
    %c0_i32_1 = arith.constant 0 : i32
    return %c0_i32, %c0_i32_0 : i32, i32
  }
  func.func @transform_6(%arg0: i32) -> (i32, i32, i32) {
    %c0_i32 = arith.constant 0 : i32
    %c0_i32_0 = arith.constant 0 : i32
    %c0_i32_1 = arith.constant 0 : i32
    return %arg0, %c0_i32, %c0_i32_0 : i32, i32, i32
  }
}

</mosaic_0001>

<bundles_post_ra>
// kernel: tpu_custom_call.1
= control target key start
LH: loop header
LB: loop body
LE: loop exit
PB: predicated region body
PF: predicated region fallthrough
CT: control target
= control target key end

     0   :  { %vm35_vm0 = vcmask 130048   ;;  %s1142_s0 = inlined_call_operand.vmem [shape: f32[2,8,16], index: 0, kind: input, shape index: {}]   ;;  %s1143_s1 = inlined_call_operand.vmem [shape: bf16[24,8], index: 1, kind: input, shape index: {}]   ;;  %s1144_s2 = inlined_call_operand.vmem [shape: f32[24,1], index: 2, kind: input, shape index: {}]   ;;  %s1145_s3 = inlined_call_operand.vmem [shape: bf16[8,8], index: 3, kind: input, shape index: {}]   ;;  %s1146_s4 = inlined_call_operand.vmem [shape: bf16[8,16], index: 4, kind: input, shape index: {}]   ;;  %s1147_s5 = inlined_call_operand.vmem [shape: f32[8,1], index: 5, kind: input, shape index: {}]   ;;  %s1148_s6 = inlined_call_operand.hbm [shape: f32[2,8,16], index: 6, kind: output, shape index: {}]  }
   0x1   :  { %v993_v0 = vld [vmem:[%s1142_s0] sm:$0xff] }
   0x2   :  { %v36_v1 = vsel %vm35_vm0, %v993_v0, 0.0 }
   0x3   :  { %11 = vsyncpa [#allocation3], 0  ;;  %v37_v2 = vrot.slane %v36_v1, 4  ;;  %v949_v21 = vmov 0.0   ;;  %vm950_vm1 = vmmov 0   ;;  %vm90_vm2 = vcmask 64512  }
   0x4   :  { %833 = vmatprep.subr.bf16.mxu0 %v949_v21  ;;  %839 = vmatprep.subr.bf16.mxu1 %v949_v21  ;;  %vm271_vm13 = vcmask 1043456  }
   0x5   :  { %v38_v3 = vadd.f32 %v37_v2, %v36_v1  ;;  %835 = vmatprep.mubr.msk.bf16.mxu0 %vm950_vm1, %v949_v21  ;;  %841 = vmatprep.mubr.msk.bf16.mxu1 %vm950_vm1, %v949_v21 }
   0x7   :  { %v39_v4 = vrot.slane %v38_v3, 2 }
   0x9   :  { %v40_v5 = vadd.f32 %v39_v4, %v38_v3 }
   0xb   :  { %v41_v6 = vrot.slane %v40_v5, 1 }
   0xd   :  { %v42_v7 = vadd.f32 %v41_v6, %v40_v5  ;;  %v194_v5 = vpack.c.bf16 %v993_v0, %v993_v0  ;;  %v1027_v6 = vld [vmem:[%s1143_s1] sm:$0xff]  }
   0xf   :  { %v44_v8 = vmul.f32 0.125, %v42_v7  ;;  %v29_v7 = vld [vmem:[%s1144_s2 + $0x8] sm:$0xff] }
  0x11   :  { %v45_v9 = vsub.f32 %v993_v0, %v44_v8  ;;  %v1037_v0 = vld [vmem:[%s1142_s0 + $0x8] sm:$0xff]  ;;  %v951_v8 = vmov 0  }
  0x12   :  { %901 = vset.pattern.permute.xlu1 %v951_v8 }
  0x13   :  { %v46_v10 = vmul.f32 %v45_v9, %v45_v9 }
  0x15   :  { %v47_v11 = vsel %vm35_vm0, %v46_v10, 0.0 }
  0x16   :  { %v48_v12 = vrot.slane %v47_v11, 4 }
  0x18   :  { %v49_v13 = vadd.f32 %v48_v12, %v47_v11 }
  0x1a   :  { %v50_v14 = vrot.slane %v49_v13, 2 }
  0x1c   :  { %v51_v15 = vadd.f32 %v50_v14, %v49_v13 }
  0x1e   :  { %v52_v16 = vrot.slane %v51_v15, 1 }
  0x20   :  { %v53_v17 = vadd.f32 %v52_v16, %v51_v15 }
  0x22   :  { %v54_v18 = vadd.f32 1e-06, %v53_v17 }
  0x24   :  { %905 = vrsqrt.f32 %v54_v18 }
  0x2e   :  { %v906_v19 = vpop.eup %905 }
  0x2f   :  { %v56_v20 = vmul.f32 %v906_v19, %v45_v9  ;;  %v429_v9 = vsel %vm35_vm0, %v1037_v0, 0.0 }
  0x30   :  { %v430_v10 = vrot.slane %v429_v9, 4 }
  0x31   :  { %57 = vxpose.xlu0.b32.start.end [1/1] (short) (narrow) %v56_v20, 16 }
  0x32   :  { %v431_v11 = vadd.f32 %v430_v10, %v429_v9 }
  0x34   :  { %v432_v12 = vrot.slane %v431_v11, 2 }
  0x36   :  { %v433_v13 = vadd.f32 %v432_v12, %v431_v11 }
  0x38   :  { %v434_v14 = vrot.slane %v433_v13, 1 }
  0x3a   :  { %v435_v15 = vadd.f32 %v434_v14, %v433_v13 }
  0x3c   :  { %v436_v16 = vmul.f32 0.125, %v435_v15 }
  0x3e   :  { %v437_v17 = vsub.f32 %v1037_v0, %v436_v16 }
  0x40   :  { %v438_v18 = vmul.f32 %v437_v17, %v437_v17 }
  0x42   :  { %v439_v19 = vsel %vm35_vm0, %v438_v18, 0.0 }
  0x43   :  { %v440_v20 = vrot.slane %v439_v19, 4 }
  0xb1   :  { %v73_v22 = vpop.trf.xlu0 }
  0xb5   :  { %v74_v23 = vpop.trf.xlu0 }
  0xb6   :  { %v89_v24 = vpack.c.bf16 %v74_v23, %v73_v22  ;;  %v441_v22 = vadd.f32 %v440_v20, %v439_v19  ;;  %v30_v19 = vld [vmem:[%s1144_s2 + $0x10] sm:$0xff] }
  0xb8   :  { %v92_v25 = vsel %vm90_vm2, %v89_v24, 0  ;;  %v442_v23 = vrot.slane %v441_v22, 2 }
  0xb9   :  { %834 = vmatpush3.bf16.xpose.msra.mxu0 %v92_v25 }
  0xc0   :  { %836 = vmatmul.mubr.msk.bf16.vlgmr.msra.gmra.mrb[0].mxu0 %vm90_vm2, %v89_v24  ;;  %v443_v24 = vadd.f32 %v442_v23, %v441_v22 }
  0xc1   :  { %847 = vmatprep.mubr.msk.bf16.mxu0 %vm90_vm2, %v1027_v6 }
  0xc2   :  { %v444_v25 = vrot.slane %v443_v24, 1 }
 0x193   :  { %v128_v26 = vpop.f32.mrb[0].mxu0 }
 0x194   :  { %v837_v27 = vpop.f32.mrb[1].mxu0  ;;  %v135_v28 = vsel %vm35_vm0, %v128_v26, -inf }
 0x195   :  { %136 = vmax.xlane.f32.xlu0 %v135_v28  ;;  %v131_v29 = vpop.f32.mrb[2].mxu0 }
 0x196   :  { %v838_v30 = vpop.f32.mrb[3].mxu0  ;;  %v138_v31 = vsel %vm35_vm0, %v131_v29, -inf }
 0x197   :  { %139 = vmax.xlane.f32.xlu1 %v138_v31 }
 0x222   :  { %v137_v32 = vpop.xlane.xlu0 %136 }
 0x223   :  { %vm141_vm3 = vcmp.ge.f32.partialorder %v128_v26, %v137_v32 }
 0x224   :  { %v143_v33 = vsel %vm141_vm3, -3e+38, %v128_v26  ;;  %v140_v34 = vpop.xlane.xlu1 %139 }
 0x225   :  { %vm142_vm4 = vcmp.ge.f32.partialorder %v131_v29, %v140_v34  ;;  %v145_v35 = vsel %vm35_vm0, %v143_v33, -inf }
 0x226   :  { %v144_v36 = vsel %vm142_vm4, -3e+38, %v131_v29  ;;  %146 = vmax.xlane.f32.xlu1 %v145_v35 }
 0x227   :  { %v148_v37 = vsel %vm35_vm0, %v144_v36, -inf }
 0x22a   :  { %149 = vmax.xlane.f32.xlu1 %v148_v37 }
 0x2b3   :  { %v147_v38 = vpop.xlane.xlu1 %146 }
 0x2b4   :  { %vm151_vm5 = vcmp.ge.f32.partialorder %v143_v33, %v147_v38 }
 0x2b5   :  { %v153_v39 = vsel %vm151_vm5, -3e+38, %v143_v33 }
 0x2b6   :  { %v155_v40 = vsel %vm35_vm0, %v153_v39, -inf }
 0x2b7   :  { %156 = vmax.xlane.f32.xlu1 %v155_v40  ;;  %v150_v41 = vpop.xlane.xlu1 %149 }
 0x2b8   :  { %vm152_vm6 = vcmp.ge.f32.partialorder %v144_v36, %v150_v41 }
 0x2b9   :  { %v154_v42 = vsel %vm152_vm6, -3e+38, %v144_v36  ;;  %v1048_v36 = vld [vmem:[%s1143_s1 + $0x8] ss:$0 sps:$4 sm:$0xff]  }
 0x2ba   :  { %v158_v43 = vsel %vm35_vm0, %v154_v42, -inf }
 0x2bb   :  { %159 = vmax.xlane.f32.xlu1 %v158_v43 }
 0x344   :  { %v157_v44 = vpop.xlane.xlu1 %156 }
 0x345   :  { %vm161_vm7 = vcmp.ge.f32.partialorder %v153_v39, %v157_v44 }
 0x346   :  { %v163_v45 = vsel %vm161_vm7, -3e+38, %v153_v39 }
 0x347   :  { %v165_v46 = vsel %vm35_vm0, %v163_v45, -inf }
 0x348   :  { %166 = vmax.xlane.f32.xlu1 %v165_v46  ;;  %v160_v47 = vpop.xlane.xlu1 %159 }
 0x349   :  { %vm162_vm8 = vcmp.ge.f32.partialorder %v154_v42, %v160_v47 }
 0x34a   :  { %v164_v48 = vsel %vm162_vm8, -3e+38, %v154_v42 }
 0x34b   :  { %v168_v49 = vsel %vm35_vm0, %v164_v48, -inf }
 0x34c   :  { %169 = vmax.xlane.f32.xlu1 %v168_v49 }
 0x3d5   :  { %v167_v50 = vpop.xlane.xlu1 %166 }
 0x3d6   :  { %vm171_vm9 = vcmp.ge.f32.partialorder %v128_v26, %v167_v50  ;;  %v1066_v50 = vld [vmem:[%s1145_s3] sm:$0xf] }
 0x3d7   :  { %v173_v51 = vsel %vm171_vm9, %v128_v26, 0.0  ;;  %v445_v26 = vadd.f32 %v444_v25, %v443_v24 }
 0x3d8   :  { %v175_v52 = vsel %vm35_vm0, %v173_v51, 0.0 }
 0x3d9   :  { %176 = vadd.xlane.f32.xlu1 %v175_v52  ;;  %v170_v53 = vpop.xlane.xlu1 %169  ;;  %v446_v27 = vadd.f32 1e-06, %v445_v26 }
 0x3da   :  { %vm172_vm10 = vcmp.ge.f32.partialorder %v131_v29, %v170_v53 }
 0x3db   :  { %v174_v54 = vsel %vm172_vm10, %v131_v29, 0.0 }
 0x3dc   :  { %v178_v55 = vsel %vm35_vm0, %v174_v54, 0.0 }
 0x3dd   :  { %179 = vadd.xlane.f32.xlu1 %v178_v55 }
 0x3ee   :  { %249 = vperm.xlu1 %901, %v29_v7  }
 0x466   :  { %v177_v56 = vpop.xlane.xlu1 %176 }
 0x467   :  { %v181_v57 = vand.u32 2147483647, %v177_v56 }
 0x469   :  { %vm183_vm11 = vcmp.lt.f32.partialorder %v181_v57, 0.001 }
 0x46a   :  { %v185_v58 = vsel %vm183_vm11, 0.001, %v177_v56  ;;  %v180_v59 = vpop.xlane.xlu1 %179 }
 0x46b   :  { %v182_v60 = vand.u32 2147483647, %v180_v59  ;;  %907 = vrcp.f32 %v185_v58 }
 0x46d   :  { %vm184_vm12 = vcmp.lt.f32.partialorder %v182_v60, 0.001 }
 0x46e   :  { %v186_v61 = vsel %vm184_vm12, 0.001, %v180_v59  ;;  %v1059_v39 = vpop.permute.xlu1 %249 }
 0x46f   :  { %909 = vrcp.f32 %v186_v61 }
 0x470   :  { %911 = vrsqrt.f32 %v446_v27 }
 0x475   :  { %v908_v62 = vpop.eup %907 }
 0x476   :  { %v191_v1 = vmul.f32 %v908_v62, %v173_v51 }
 0x479   :  { %v910_v63 = vpop.eup %909 }
 0x47a   :  { %v192_v2 = vmul.f32 %v910_v63, %v174_v54  ;;  %v912_v28 = vpop.eup %911 }
 0x47b   :  { %v448_v29 = vmul.f32 %v912_v28, %v437_v17 }
 0x47c   :  { %v193_v3 = vpack.c.bf16 %v192_v2, %v191_v1 }
 0x47d   :  { %449 = vxpose.xlu0.b32.start.end [1/1] (short) (narrow) %v448_v29, 16 }
 0x47e   :  { %v199_v4 = vsel %vm35_vm0, %v193_v3, 0 }
 0x47f   :  { %840 = vmatpush3.bf16.xpose.msra.mxu1 %v199_v4 }
 0x480   :  { %851 = vmatprep.subr.bf16.mxu1 %v949_v21 }
 0x486   :  { %842 = vmatmul.mubr.msk.bf16.vlgmr.msra.gmra.mrb[0].mxu1 %vm35_vm0, %v194_v5 }
 0x487   :  { %853 = vmatprep.mubr.msk.bf16.mxu1 %vm950_vm1, %v949_v21 }
 0x4a6   :  { %902 = vset.pattern.permute.xlu0 %v951_v8 }
 0x4fd   :  { %v465_v46 = vpop.trf.xlu0 }
 0x501   :  { %v466_v51 = vpop.trf.xlu0 }
 0x502   :  { %v481_v52 = vpack.c.bf16 %v466_v51, %v465_v46  ;;  %v585_v51 = vpack.c.bf16 %v1037_v0, %v1037_v0 }
 0x504   :  { %v483_v53 = vsel %vm90_vm2, %v481_v52, 0 }
 0x559   :  { %v235_v30 = vpop.f32.mrb[0].mxu1 }
 0x55a   :  { %v241_v31 = vpack.c.bf16 %v235_v30, %v235_v30  ;;  %v843_v32 = vpop.f32.mrb[1].mxu1  ;;  %v28_v30 = vld [vmem:[%s1144_s2] sm:$0xff] }
 0x55b   :  { %v238_v33 = vpop.f32.mrb[2].mxu1 }
 0x55c   :  { %v273_v34 = vsel %vm271_vm13, %v241_v31, 0  ;;  %v844_v35 = vpop.f32.mrb[3].mxu1  ;;  %893 = vmatprep.subr.msk.bf16.mxu0 %vm271_vm13, %v241_v31  ;;  %v33_v31 = vld [vmem:[%s1147_s5] sm:$0xff] }
 0x55d   :  { %846 = vmatpush3.bf16.msra.mxu0 %v273_v34 }
 0x55e   :  { %857 = vmatprep.subr.bf16.mxu0 %v949_v21 }
 0x560   :  { %848 = vmatmul.mubr.msk.bf16.vlgmr.msra.gmra.mrb[4].mxu0 %vm90_vm2, %v1048_v36 }
 0x561   :  { %859 = vmatprep.mubr.msk.bf16.mxu0 %vm950_vm1, %v949_v21 }
 0x633   :  { %v1055_v37 = vpop.f32.mrb[4].mxu0 }
 0x634   :  { %v1057_v38 = vpop.f32.mrb[5].mxu0 }
 0x635   :  { %v850_v40 = vpop.f32.mrb[6].mxu0 }
 0x636   :  { %v312_v41 = vpop.f32.mrb[7].mxu0 }
 0x637   :  { %v313_v42 = vadd.f32 %v312_v41, %v1059_v39 }
 0x639   :  { %v800_v43 = vmul.f32 -1.442695, %v313_v42 }
 0x63b   :  { %913 = vpow2.f32 %v800_v43 }
 0x645   :  { %v914_v44 = vpop.eup %913 }
 0x646   :  { %v326_v45 = vadd.f32 1.0, %v914_v44  ;;  %v32_v44 = vld [vmem:[%s1146_s4] sm:$0xf]  ;;  %s952_s4 = smov [#allocation2]  }
 0x647   :  { %s783_s5 = sshll.u32 %s952_s4, 4  ;;  %s784_s5 = int_to_ptr.vmem [resolvable:$true] %s783_s5 }
 0x648   :  { %915 = vrcp.f32 %v326_v45  ;;  %s925_s13 = scalar_lea.vmem %s784_s5, 256  ;;  %p930_p1 = scmp.lt.s32.totalorder %s784_s5, %s784_s5 }
 0x649   :  { %p926_p0 = scmp.ne.s32.totalorder %s784_s5, %s925_s13  ;;  %p931_p2 = scmp.lt.s32.totalorder %s925_s13, %s925_s13 }
 0x64b   :  { %p932_p3 = por %p931_p2, %p930_p1 }
 0x64d   :  { %p933_p4 = pnand %p932_p3, %p926_p0 }
 0x652   :  { %v916_v47 = vpop.eup %915 }
 0x653   :  { %v329_v48 = vpack.c.bf16 %v916_v47, %v916_v47 }
 0x655   :  { %v334_v49 = vsel %vm271_vm13, %v329_v48, 0 }
 0x656   :  { %852 = vmatpush3.bf16.msra.mxu1 %v334_v49 }
 0x657   :  { %863 = vmatprep.subr.bf16.mxu1 %v949_v21 }
 0x659   :  { %854 = vmatmul.mubr.msk.bf16.vlgmr.msra.gmra.mrb[4].mxu1 %vm90_vm2, %v1066_v50 }
 0x65a   :  { %865 = vmatprep.mubr.msk.bf16.mxu1 %vm950_vm1, %v949_v21 }
 0x65f   :  { %864 = vmatpush3.bf16.xpose.msra.mxu1 %v483_v53 }
 0x666   :  { %866 = vmatmul.mubr.msk.bf16.vlgmr.msra.gmra.mrb[8].mxu1 %vm90_vm2, %v481_v52 }
 0x667   :  { %877 = vmatprep.mubr.msk.bf16.mxu1 %vm90_vm2, %v1027_v6 }
 0x72c   :  { %v370_v54 = vpop.f32.mrb[4].mxu1 }
 0x72d   :  { %v855_v55 = vpop.f32.mrb[5].mxu1 }
 0x72e   :  { %v373_v56 = vpop.f32.mrb[6].mxu1 }
 0x72f   :  { %v856_v57 = vpop.f32.mrb[7].mxu1 }
 0x739   :  { %v519_v58 = vpop.f32.mrb[8].mxu1 }
 0x73a   :  { %v867_v59 = vpop.f32.mrb[9].mxu1  ;;  %v526_v60 = vsel %vm35_vm0, %v519_v58, -inf }
 0x73b   :  { %527 = vmax.xlane.f32.xlu1 %v526_v60  ;;  %v522_v61 = vpop.f32.mrb[10].mxu1 }
 0x73c   :  { %v868_v62 = vpop.f32.mrb[11].mxu1  ;;  %v529_v63 = vsel %vm35_vm0, %v522_v61, -inf }
 0x73f   :  { %530 = vmax.xlane.f32.xlu1 %v529_v63 }
 0x7c8   :  { %v528_v1 = vpop.xlane.xlu1 %527 }
 0x7c9   :  { %vm532_vm14 = vcmp.ge.f32.partialorder %v519_v58, %v528_v1 }
 0x7ca   :  { %v534_v2 = vsel %vm532_vm14, -3e+38, %v519_v58 }
 0x7cb   :  { %v536_v3 = vsel %vm35_vm0, %v534_v2, -inf }
 0x7cc   :  { %537 = vmax.xlane.f32.xlu1 %v536_v3  ;;  %v531_v4 = vpop.xlane.xlu1 %530 }
 0x7cd   :  { %vm533_vm15 = vcmp.ge.f32.partialorder %v522_v61, %v531_v4 }
 0x7ce   :  { %v535_v5 = vsel %vm533_vm15, -3e+38, %v522_v61 }
 0x7cf   :  { %v539_v6 = vsel %vm35_vm0, %v535_v5, -inf }
 0x7d0   :  { %540 = vmax.xlane.f32.xlu1 %v539_v6 }
 0x859   :  { %v538_v7 = vpop.xlane.xlu1 %537 }
 0x85a   :  { %vm542_vm3 = vcmp.ge.f32.partialorder %v534_v2, %v538_v7 }
 0x85b   :  { %v544_v8 = vsel %vm542_vm3, -3e+38, %v534_v2 }
 0x85c   :  { %v546_v9 = vsel %vm35_vm0, %v544_v8, -inf }
 0x85d   :  { %547 = vmax.xlane.f32.xlu0 %v546_v9  ;;  %v541_v10 = vpop.xlane.xlu1 %540 }
 0x85e   :  { %vm543_vm4 = vcmp.ge.f32.partialorder %v535_v5, %v541_v10 }
 0x85f   :  { %v545_v11 = vsel %vm543_vm4, -3e+38, %v535_v5 }
 0x860   :  { %v549_v12 = vsel %vm35_vm0, %v545_v11, -inf }
 0x861   :  { %550 = vmax.xlane.f32.xlu1 %v549_v12 }
 0x8ea   :  { %v548_v13 = vpop.xlane.xlu0 %547 }
 0x8eb   :  { %vm552_vm5 = vcmp.ge.f32.partialorder %v544_v8, %v548_v13 }
 0x8ec   :  { %v554_v14 = vsel %vm552_vm5, -3e+38, %v544_v8 }
 0x8ed   :  { %v556_v15 = vsel %vm35_vm0, %v554_v14, -inf }
 0x8ee   :  { %557 = vmax.xlane.f32.xlu1 %v556_v15  ;;  %v551_v16 = vpop.xlane.xlu1 %550 }
 0x8ef   :  { %vm553_vm6 = vcmp.ge.f32.partialorder %v545_v11, %v551_v16 }
 0x8f0   :  { %v555_v17 = vsel %vm553_vm6, -3e+38, %v545_v11 }
 0x8f1   :  { %v559_v18 = vsel %vm35_vm0, %v555_v17, -inf }
 0x8f2   :  { %560 = vmax.xlane.f32.xlu1 %v559_v18 }
 0x903   :  { %254 = vperm.xlu1 %901, %v30_v19  }
 0x97b   :  { %v558_v20 = vpop.xlane.xlu1 %557 }
 0x97c   :  { %vm562_vm7 = vcmp.ge.f32.partialorder %v519_v58, %v558_v20 }
 0x97d   :  { %v564_v22 = vsel %vm562_vm7, %v519_v58, 0.0 }
 0x97e   :  { %v566_v23 = vsel %vm35_vm0, %v564_v22, 0.0 }
 0x97f   :  { %567 = vadd.xlane.f32.xlu1 %v566_v23  ;;  %v561_v24 = vpop.xlane.xlu1 %560 }
 0x980   :  { %vm563_vm8 = vcmp.ge.f32.partialorder %v522_v61, %v561_v24 }
 0x981   :  { %v565_v25 = vsel %vm563_vm8, %v522_v61, 0.0 }
 0x982   :  { %v569_v26 = vsel %vm35_vm0, %v565_v25, 0.0 }
 0x983   :  { %570 = vadd.xlane.f32.xlu1 %v569_v26  ;;  %v1090_v27 = vpop.permute.xlu1 %254 }
 0x984   :  { %v318_v28 = vadd.f32 %v1055_v37, %v1090_v27 }
 0x986   :  { %v376_v29 = vadd.f32 %v370_v54, %v318_v28 }
 0x994   :  { %244 = vperm.xlu1 %901, %v28_v30  }
 0x998   :  { %380 = vperm.xlu1 %901, %v33_v31  }
 0xa0c   :  { %v568_v32 = vpop.xlane.xlu1 %567 }
 0xa0d   :  { %v572_v33 = vand.u32 2147483647, %v568_v32 }
 0xa0f   :  { %vm574_vm9 = vcmp.lt.f32.partialorder %v572_v33, 0.001 }
 0xa10   :  { %v576_v34 = vsel %vm574_vm9, 0.001, %v568_v32  ;;  %v571_v35 = vpop.xlane.xlu1 %570 }
 0xa11   :  { %v573_v40 = vand.u32 2147483647, %v571_v35  ;;  %917 = vrcp.f32 %v576_v34 }
 0xa13   :  { %vm575_vm10 = vcmp.lt.f32.partialorder %v573_v40, 0.001 }
 0xa14   :  { %v577_v37 = vsel %vm575_vm10, 0.001, %v571_v35  ;;  %v245_v41 = vpop.permute.xlu1 %244 }
 0xa15   :  { %919 = vrcp.f32 %v577_v37  ;;  %v310_v42 = vadd.f32 %v1057_v38, %v245_v41 }
 0xa17   :  { %v377_v43 = vpack.c.bf16 %v310_v42, %v376_v29 }
 0xa18   :  { %v381_v52 = vpop.permute.xlu1 %380 }
 0xa19   :  { %858 = vmatpush3.bf16.msra.mxu0 %v377_v43 }
 0xa1a   :  { %869 = vmatprep.subr.bf16.mxu0 %v949_v21 }
 0xa1b   :  { %v918_v45 = vpop.eup %917 }
 0xa1c   :  { %860 = vmatmul.mubr.msk.bf16.vlgmr.msra.gmra.mrb[8].mxu0 %vm35_vm0, %v32_v44  ;;  %v582_v47 = vmul.f32 %v918_v45, %v564_v22 }
 0xa1d   :  { %871 = vmatprep.mubr.msk.bf16.mxu0 %vm950_vm1, %v949_v21 }
 0xa1f   :  { %v920_v46 = vpop.eup %919 }
 0xa20   :  { %v583_v48 = vmul.f32 %v920_v46, %v565_v25 }
 0xa22   :  { %v584_v49 = vpack.c.bf16 %v583_v48, %v582_v47 }
 0xa24   :  { %v590_v38 = vsel %vm35_vm0, %v584_v49, 0 }
 0xa25   :  { %870 = vmatpush3.bf16.xpose.msra.mxu0 %v590_v38 }
 0xa26   :  { %881 = vmatprep.subr.bf16.mxu0 %v949_v21 }
 0xa2c   :  { %872 = vmatmul.mubr.msk.bf16.vlgmr.msra.gmra.mrb[12].mxu0 %vm35_vm0, %v585_v51 }
 0xa2d   :  { %883 = vmatprep.mubr.msk.bf16.mxu0 %vm950_vm1, %v949_v21 }
 0xaef   :  { %v420_v53 = vpop.f32.mrb[8].mxu0 }
 0xaf0   :  { %v421_v54 = vadd.f32 %v420_v53, %v381_v52  ;;  %v861_v55 = vpop.f32.mrb[9].mxu0 }
 0xaf1   :  { %v423_v56 = vpop.f32.mrb[10].mxu0 }
 0xaf2   :  { %426 = vst.msk [vmem:[#allocation2] sm:$0xff] %vm35_vm0, %v421_v54  ;;  %v862_v57 = vpop.f32.mrb[11].mxu0 }
 0xaff   :  { %v626_v58 = vpop.f32.mrb[12].mxu0 }
 0xb00   :  { %v632_v59 = vpack.c.bf16 %v626_v58, %v626_v58  ;;  %v873_v60 = vpop.f32.mrb[13].mxu0 }
 0xb01   :  { %v629_v61 = vpop.f32.mrb[14].mxu0 }
 0xb02   :  { %v634_v62 = vsel %vm271_vm13, %v632_v59, 0  ;;  %v874_v0 = vpop.f32.mrb[15].mxu0  ;;  %894 = vmatprep.subr.msk.bf16.mxu1 %vm271_vm13, %v632_v59 }
 0xb03   :  { %876 = vmatpush3.bf16.msra.mxu1 %v634_v62 }
 0xb04   :  { %887 = vmatprep.subr.bf16.mxu1 %v949_v21 }
 0xb06   :  { %878 = vmatmul.mubr.msk.bf16.vlgmr.msra.gmra.mrb[12].mxu1 %vm90_vm2, %v1048_v36 }
 0xb07   :  { %889 = vmatprep.mubr.msk.bf16.mxu1 %vm950_vm1, %v949_v21 }
 0xbd9   :  { %v879_v63 = vpop.f32.mrb[12].mxu1 }
 0xbda   :  { %v670_v1 = vpop.f32.mrb[13].mxu1  ;;  %v679_v21 = vadd.f32 %v879_v63, %v1090_v27 }
 0xbdb   :  { %v880_v2 = vpop.f32.mrb[14].mxu1  ;;  %v671_v11 = vadd.f32 %v670_v1, %v245_v41 }
 0xbdc   :  { %v673_v3 = vpop.f32.mrb[15].mxu1 }
 0xbdd   :  { %v674_v4 = vadd.f32 %v673_v3, %v1059_v39 }
 0xbdf   :  { %v808_v5 = vmul.f32 -1.442695, %v674_v4 }
 0xbe1   :  { %921 = vpow2.f32 %v808_v5 }
 0xbeb   :  { %v922_v6 = vpop.eup %921 }
 0xbec   :  { %v687_v7 = vadd.f32 1.0, %v922_v6 }
 0xbee   :  { %923 = vrcp.f32 %v687_v7 }
 0xbf8   :  { %v924_v8 = vpop.eup %923 }
 0xbf9   :  { %v690_v9 = vpack.c.bf16 %v924_v8, %v924_v8 }
 0xbfb   :  { %v692_v10 = vsel %vm271_vm13, %v690_v9, 0 }
 0xbfc   :  { %882 = vmatpush3.bf16.msra.mxu0 %v692_v10 }
 0xbff   :  { %884 = vmatmul.mubr.msk.bf16.vlgmr.msra.gmra.mrb[16].mxu0 %vm90_vm2, %v1066_v50 }
 0xcd2   :  { %v728_v36 = vpop.f32.mrb[16].mxu0 }
 0xcd3   :  { %v734_v12 = vadd.f32 %v728_v36, %v679_v21  ;;  %v885_v13 = vpop.f32.mrb[17].mxu0 }
 0xcd4   :  { %v731_v39 = vpop.f32.mrb[18].mxu0 }
 0xcd5   :  { %v735_v14 = vpack.c.bf16 %v671_v11, %v734_v12  ;;  %v886_v15 = vpop.f32.mrb[19].mxu0 }
 0xcd7   :  { %888 = vmatpush3.bf16.msra.mxu1 %v735_v14 }
 0xcda   :  { %890 = vmatmul.mubr.msk.bf16.vlgmr.msra.gmra.mrb[16].mxu1 %vm35_vm0, %v32_v44 }
 0xdad   :  { %v770_v16 = vpop.f32.mrb[16].mxu1 }
 0xdae   :  { %v771_v17 = vadd.f32 %v770_v16, %v381_v52  ;;  %v891_v18 = vpop.f32.mrb[17].mxu1 }
 0xdaf   :  { %v773_v19 = vpop.f32.mrb[18].mxu1 }
 0xdb0   :  { %777 = vst.msk [vmem:[#allocation2 + $0x8] sm:$0xff] %vm35_vm0, %v771_v17  ;;  %v892_v50 = vpop.f32.mrb[19].mxu1 }
 0xdb1   :  { %936 = shalt.err (!%p933_p4)
}
 0xdb2   :  { %s937_s16 = scalar_lea.hbm %s1148_s6, 256 }
 0xdb3   :  { %p938_p5 = scmp.ne.s32.totalorder %s1148_s6, %s937_s16  ;;  %p941_p6 = scmp.lt.u32.totalorder %s937_s16, %s1148_s6 }
 0xdb5   :  { %p943_p7 = pnand %p941_p6, %p938_p5 }
 0xdb7   :  { %946 = shalt.err (!%p943_p7)
}
 0xdb8   :  { %s953_s21 = smov 128   ;;  %s954_s22 = smov 8  }
 0xdb9   :  { %789 = dma.vmem_to_hbm [thread:$0]  %s784_s5, 256, %s1148_s6, [#allocation3], %s953_s21, %s953_s21, %s954_s22  }
 0xdba   :  { %947 = dma.done.wait [#allocation3], 256  }
 0xdbb   :  { %948 = vsyncadd [#allocation3], 4294967040 }
 0xdbc   :  { %793 = vsyncpa [#allocation3], 1 }

</bundles_post_ra>
